<compile_context>
chip_gen: v5e
topology: v5e:2x2
jax: 0.10.0
libtpu: 0.0.40
codegen_flags: <defaults>
</compile_context>

<pallas_src>
import functools

import jax
import jax.numpy as jnp
from jax.experimental import pallas as pl
from jax.experimental.pallas import tpu as pltpu

HIDDEN = 16  # nn.GRU(hidden_size=16, bidirectional=True)


def label_model_kernel(xc_ref, wih_ref, whh_ref, bgi_ref, bhn_ref,
                       wout_ref, bout_ref, wmix_ref,
                       out_ref, sum_ref, *, B, T, H):
    # ---- input projection for every timestep and both directions: ONE matmul ----
    # xc_ref: (T*B, 2F) rows = [x_fwd(t=s) | x_bwd(t=T-1-s)] for row s*B + b
    # wih_ref: (2F, 6H) block-diagonal, gate-major columns [r_f r_b | z_f z_b | n_f n_b]
    gi_all = (jnp.dot(xc_ref[...], wih_ref[...],
                      preferred_element_type=jnp.float32)
              + bgi_ref[...])                                    # (T*B, 6H)

    whh = whh_ref[...]                                           # (2H, 6H)
    bhn = jnp.broadcast_to(bhn_ref[...], (B, 2 * H))             # hoisted out of loop

    # ---- interleaved fwd/bwd recurrence: one MXU push per step ----
    h = jnp.zeros((B, 2 * H), jnp.float32)                       # [h_fwd | h_bwd]
    hs = []
    for s in range(T):                                           # static, unrolled
        gi = gi_all[s * B:(s + 1) * B, :]                        # (B, 6H)
        gh = jnp.dot(h, whh, preferred_element_type=jnp.float32) # (B, 6H)
        r = jax.nn.sigmoid(gi[:, 0:2 * H] + gh[:, 0:2 * H])
        z = jax.nn.sigmoid(gi[:, 2 * H:4 * H] + gh[:, 2 * H:4 * H])
        n = jnp.tanh(gi[:, 4 * H:6 * H] + r * (gh[:, 4 * H:6 * H] + bhn))
        h = (1.0 - z) * n + z * h
        hs.append(h)

    # ---- re-pair directions per time step (epilogue, off the serial chain) ----
    # rnn output at time t = [h_fwd(t) | h_bwd(t)];  h_bwd(t) was produced at step T-1-t.
    fwd = jnp.concatenate([hs[t][:, 0:H] for t in range(T)], axis=0)            # (T*B, H)
    bwd = jnp.concatenate([hs[T - 1 - t][:, H:2 * H] for t in range(T)], axis=0)  # (T*B, H)
    rnn = jnp.concatenate([fwd, bwd], axis=-1)                                  # (T*B, 2H)

    # ---- Linear + tanh: single matmul over the whole slab ----
    lin = jnp.dot(rnn, wout_ref[...],
                  preferred_element_type=jnp.float32) + bout_ref[...]           # (T*B, F)
    out = jnp.tanh(lin)
    out_ref[...] = out

    # ---- softmax-weighted channel sum as a matmul with a zero-padded weight ----
    sum_ref[...] = jnp.dot(out, wmix_ref[...],
                           preferred_element_type=jnp.float32)                  # (T*B, 1)


def init_params(key, feat_size, hidden=HIDDEN):
    """Deterministic synthetic parameters matching the module's shapes."""
    ks = jax.random.split(key, 10)
    bnd_rnn = 1.0 / float(hidden) ** 0.5
    bnd_lin = 1.0 / float(2 * hidden) ** 0.5

    def u(k, shape, b):
        return jax.random.uniform(k, shape, jnp.float32, -b, b)

    return dict(
        # GRU weights stored pre-transposed: (in, 3H) / (H, 3H), gate order r|z|n.
        wih_f=u(ks[0], (feat_size, 3 * hidden), bnd_rnn),
        whh_f=u(ks[1], (hidden, 3 * hidden), bnd_rnn),
        bih_f=u(ks[2], (1, 3 * hidden), bnd_rnn),
        bhh_f=u(ks[3], (1, 3 * hidden), bnd_rnn),
        wih_b=u(ks[4], (feat_size, 3 * hidden), bnd_rnn),
        whh_b=u(ks[5], (hidden, 3 * hidden), bnd_rnn),
        bih_b=u(ks[6], (1, 3 * hidden), bnd_rnn),
        bhh_b=u(ks[7], (1, 3 * hidden), bnd_rnn),
        # nn.Linear(32, featSize), stored transposed.
        w_out=u(ks[8], (2 * hidden, feat_size), bnd_lin),
        b_out=u(ks[9], (1, feat_size), bnd_lin),
        # self.weights = Parameter(ones(6)) / 6
        wmix=jnp.ones((1, 6), jnp.float32) / 6.0,
    )


def label_model_forward(x, params):
    B, T, F = x.shape
    H = params['whh_f'].shape[0]
    assert F > 6, "featSize must be > 6 (output is split [:6] / [6:])"

    # ---------- parameter re-packing (plain JAX, once per call) ----------
    wih_f, wih_b = params['wih_f'], params['wih_b']        # (F, 3H), gates r|z|n
    whh_f, whh_b = params['whh_f'], params['whh_b']        # (H, 3H)
    bih_f, bih_b = params['bih_f'][0], params['bih_b'][0]  # (3H,)
    bhh_f, bhh_b = params['bhh_f'][0], params['bhh_b'][0]

    zF = jnp.zeros((F, H), jnp.float32)
    zH = jnp.zeros((H, H), jnp.float32)
    wih_cols, whh_cols, bgi_parts = [], [], []
    for g in range(3):                                     # gate-major: r, z, n
        sl = slice(g * H, (g + 1) * H)
        wih_cols += [jnp.concatenate([wih_f[:, sl], zF], axis=0),   # fwd block
                     jnp.concatenate([zF, wih_b[:, sl]], axis=0)]   # bwd block
        whh_cols += [jnp.concatenate([whh_f[:, sl], zH], axis=0),
                     jnp.concatenate([zH, whh_b[:, sl]], axis=0)]
        bf, bb = bih_f[sl], bih_b[sl]
        if g < 2:   # hh-bias of r and z can be folded into the input projection
            bf = bf + bhh_f[sl]
            bb = bb + bhh_b[sl]
        bgi_parts += [bf, bb]
    w_ih_big = jnp.concatenate(wih_cols, axis=1)           # (2F, 6H)
    w_hh_big = jnp.concatenate(whh_cols, axis=1)           # (2H, 6H)
    b_gi = jnp.concatenate(bgi_parts).reshape(1, 6 * H)
    # hh-bias of the n gate must stay inside r * (.) -> passed separately
    b_hn = jnp.concatenate([bhh_f[2 * H:], bhh_b[2 * H:]]).reshape(1, 2 * H)

    w_mix = jax.nn.softmax(params['wmix'][0])              # (6,) softmax(dim=0)
    w_mix_pad = jnp.concatenate(
        [w_mix, jnp.zeros((F - 6,), jnp.float32)]).reshape(F, 1)

    # ---------- input re-packing: fwd time s next to bwd time T-1-s ----------
    x_t = jnp.transpose(x, (1, 0, 2))                      # (T, B, F)
    x_comb = jnp.concatenate([x_t, x_t[::-1]], axis=-1).reshape(T * B, 2 * F)

    vmem = pl.BlockSpec(memory_space=pltpu.MemorySpace.VMEM)
    kernel = functools.partial(label_model_kernel, B=B, T=T, H=H)
    out_flat, sum_flat = pl.pallas_call(
        kernel,
        out_shape=(jax.ShapeDtypeStruct((T * B, F), jnp.float32),
                   jax.ShapeDtypeStruct((T * B, 1), jnp.float32)),
        in_specs=[vmem] * 8,
        out_specs=(vmem, vmem),
    )(x_comb, w_ih_big, w_hh_big, b_gi, b_hn,
      params['w_out'], params['b_out'], w_mix_pad)

    # ---------- glue reshapes / slicing (free XLA ops) ----------
    out = jnp.transpose(out_flat.reshape(T, B, F), (1, 0, 2))      # (B, T, F)
    rnn1, rnn2 = out[:, :, :6], out[:, :, 6:]
    summed = jnp.transpose(sum_flat.reshape(T, B), (1, 0)).reshape(B, 1, T, 1)
    return summed, rnn1, rnn2


def reference_forward(x, p):
    """Pure-JAX reference of the same math for a correctness check."""
    B, T, F = x.shape
    H = p['whh_f'].shape[0]

    def gru_dir(wih, whh, bih, bhh, reverse):
        def step(h, xt):
            gi = xt @ wih + bih[0]
            gh = h @ whh + bhh[0]
            r = jax.nn.sigmoid(gi[:, :H] + gh[:, :H])
            z = jax.nn.sigmoid(gi[:, H:2 * H] + gh[:, H:2 * H])
            n = jnp.tanh(gi[:, 2 * H:] + r * gh[:, 2 * H:])
            hn = (1.0 - z) * n + z * h
            return hn, hn
        xs = jnp.swapaxes(x, 0, 1)
        if reverse:
            xs = xs[::-1]
        _, hs = jax.lax.scan(step, jnp.zeros((B, H), jnp.float32), xs)
        if reverse:
            hs = hs[::-1]
        return jnp.swapaxes(hs, 0, 1)

    fwd = gru_dir(p['wih_f'], p['whh_f'], p['bih_f'], p['bhh_f'], False)
    bwd = gru_dir(p['wih_b'], p['whh_b'], p['bih_b'], p['bhh_b'], True)
    rnn = jnp.concatenate([fwd, bwd], axis=2)
    out = jnp.tanh(rnn @ p['w_out'] + p['b_out'][0])
    r1, r2 = out[:, :, :6], out[:, :, 6:]
    w = jax.nn.softmax(p['wmix'][0])
    s = jnp.sum(r1 * w, axis=2).reshape(B, 1, T, 1)
    return s, r1, r2


if __name__ == "__main__":
    key = jax.random.PRNGKey(0)
    kx, kp = jax.random.split(key)
    B, T, F = 2, 8, 8                       # batch, timesteps, featSize (>6)
    x = jax.random.normal(kx, (B, T, F), jnp.float32)
    params = init_params(kp, F)

    out, rnn1, rnn2 = label_model_forward(x, params)
    jax.block_until_ready((out, rnn1, rnn2))

    ref_out, ref_r1, ref_r2 = reference_forward(x, params)
    assert out.shape == (B, 1, T, 1)
    assert rnn1.shape == (B, T, 6) and rnn2.shape == (B, T, F - 6)
    assert float(jnp.max(jnp.abs(out - ref_out))) < 1e-3
    assert float(jnp.max(jnp.abs(rnn1 - ref_r1))) < 1e-3
    assert float(jnp.max(jnp.abs(rnn2 - ref_r2))) < 1e-3

    print("KERNEL_OK")
</pallas_src>

<mosaic_0001>
module attributes {stable_mosaic.version = 11 : i64} {
  func.func @label_model_kernel(%arg0: memref<16x16xf32, #tpu.memory_space<vmem>>, %arg1: memref<16x96xf32, #tpu.memory_space<vmem>>, %arg2: memref<32x96xf32, #tpu.memory_space<vmem>>, %arg3: memref<1x96xf32, #tpu.memory_space<vmem>>, %arg4: memref<1x32xf32, #tpu.memory_space<vmem>>, %arg5: memref<32x8xf32, #tpu.memory_space<vmem>>, %arg6: memref<1x8xf32, #tpu.memory_space<vmem>>, %arg7: memref<8x1xf32, #tpu.memory_space<vmem>>, %arg8: memref<16x8xf32, #tpu.memory_space<vmem>>, %arg9: memref<16x1xf32, #tpu.memory_space<vmem>>) attributes {dimension_semantics = [], scalar_prefetch = 0 : i64, scratch_operands = 0 : i64, tpu.core_type = #tpu.core_type<tc>} {
    %c0 = arith.constant 0 : index
    %c0_0 = arith.constant 0 : index
    %0 = vector.load %arg0[%c0, %c0_0] : memref<16x16xf32, #tpu.memory_space<vmem>>, vector<16x16xf32>
    %c0_1 = arith.constant 0 : index
    %c0_2 = arith.constant 0 : index
    %1 = vector.load %arg1[%c0_1, %c0_2] : memref<16x96xf32, #tpu.memory_space<vmem>>, vector<16x96xf32>
    %cst = arith.constant dense<0.000000e+00> : vector<16x96xf32>
    %2 = tpu.matmul %0, %1, %cst {dimension_numbers = #tpu.dot_dimension_numbers<[1], [0], [0], [1], [0, 0, 1, 1], [], []>} : vector<16x16xf32>, vector<16x96xf32>, vector<16x96xf32> -> vector<16x96xf32>
    %c0_3 = arith.constant 0 : index
    %c0_4 = arith.constant 0 : index
    %3 = vector.load %arg3[%c0_3, %c0_4] : memref<1x96xf32, #tpu.memory_space<vmem>>, vector<1x96xf32>
    %4 = vector.broadcast %3 : vector<1x96xf32> to vector<16x96xf32>
    %5 = arith.addf %2, %4 : vector<16x96xf32>
    %c0_5 = arith.constant 0 : index
    %c0_6 = arith.constant 0 : index
    %6 = vector.load %arg2[%c0_5, %c0_6] : memref<32x96xf32, #tpu.memory_space<vmem>>, vector<32x96xf32>
    %c0_7 = arith.constant 0 : index
    %c0_8 = arith.constant 0 : index
    %7 = vector.load %arg4[%c0_7, %c0_8] : memref<1x32xf32, #tpu.memory_space<vmem>>, vector<1x32xf32>
    %8 = vector.shape_cast %7 : vector<1x32xf32> to vector<1x32xf32>
    %9 = vector.broadcast %8 : vector<1x32xf32> to vector<2x32xf32>
    %cst_9 = arith.constant 0.000000e+00 : f32
    %10 = vector.broadcast %cst_9 : f32 to vector<2x32xf32>
    %11 = vector.extract_strided_slice %5 {offsets = [0, 0], sizes = [2, 96], strides = [1, 1]} : vector<16x96xf32> to vector<2x96xf32>
    %cst_10 = arith.constant dense<0.000000e+00> : vector<2x96xf32>
    %12 = tpu.matmul %10, %6, %cst_10 {dimension_numbers = #tpu.dot_dimension_numbers<[1], [0], [0], [1], [0, 0, 1, 1], [], []>} : vector<2x32xf32>, vector<32x96xf32>, vector<2x96xf32> -> vector<2x96xf32>
    %13 = vector.extract_strided_slice %11 {offsets = [0, 0], sizes = [2, 32], strides = [1, 1]} : vector<2x96xf32> to vector<2x32xf32>
    %14 = vector.extract_strided_slice %12 {offsets = [0, 0], sizes = [2, 32], strides = [1, 1]} : vector<2x96xf32> to vector<2x32xf32>
    %15 = arith.addf %13, %14 : vector<2x32xf32>
    %16 = arith.negf %15 : vector<2x32xf32>
    %17 = math.exp %16 : vector<2x32xf32>
    %cst_11 = arith.constant 1.000000e+00 : f32
    %18 = vector.broadcast %cst_11 : f32 to vector<2x32xf32>
    %19 = arith.addf %18, %17 : vector<2x32xf32>
    %20 = arith.divf %18, %19 : vector<2x32xf32>
    %21 = vector.extract_strided_slice %11 {offsets = [0, 32], sizes = [2, 32], strides = [1, 1]} : vector<2x96xf32> to vector<2x32xf32>
    %22 = vector.extract_strided_slice %12 {offsets = [0, 32], sizes = [2, 32], strides = [1, 1]} : vector<2x96xf32> to vector<2x32xf32>
    %23 = arith.addf %21, %22 : vector<2x32xf32>
    %24 = arith.negf %23 : vector<2x32xf32>
    %25 = math.exp %24 : vector<2x32xf32>
    %cst_12 = arith.constant 1.000000e+00 : f32
    %26 = vector.broadcast %cst_12 : f32 to vector<2x32xf32>
    %27 = arith.addf %26, %25 : vector<2x32xf32>
    %28 = arith.divf %26, %27 : vector<2x32xf32>
    %29 = vector.extract_strided_slice %11 {offsets = [0, 64], sizes = [2, 32], strides = [1, 1]} : vector<2x96xf32> to vector<2x32xf32>
    %30 = vector.extract_strided_slice %12 {offsets = [0, 64], sizes = [2, 32], strides = [1, 1]} : vector<2x96xf32> to vector<2x32xf32>
    %31 = arith.addf %30, %9 : vector<2x32xf32>
    %32 = arith.mulf %20, %31 : vector<2x32xf32>
    %33 = arith.addf %29, %32 : vector<2x32xf32>
    %34 = math.tanh %33 : vector<2x32xf32>
    %cst_13 = arith.constant 1.000000e+00 : f32
    %35 = vector.broadcast %cst_13 : f32 to vector<2x32xf32>
    %36 = arith.subf %35, %28 : vector<2x32xf32>
    %37 = arith.mulf %36, %34 : vector<2x32xf32>
    %38 = arith.mulf %28, %10 : vector<2x32xf32>
    %39 = arith.addf %37, %38 : vector<2x32xf32>
    %40 = vector.extract_strided_slice %5 {offsets = [2, 0], sizes = [2, 96], strides = [1, 1]} : vector<16x96xf32> to vector<2x96xf32>
    %cst_14 = arith.constant dense<0.000000e+00> : vector<2x96xf32>
    %41 = tpu.matmul %39, %6, %cst_14 {dimension_numbers = #tpu.dot_dimension_numbers<[1], [0], [0], [1], [0, 0, 1, 1], [], []>} : vector<2x32xf32>, vector<32x96xf32>, vector<2x96xf32> -> vector<2x96xf32>
    %42 = vector.extract_strided_slice %40 {offsets = [0, 0], sizes = [2, 32], strides = [1, 1]} : vector<2x96xf32> to vector<2x32xf32>
    %43 = vector.extract_strided_slice %41 {offsets = [0, 0], sizes = [2, 32], strides = [1, 1]} : vector<2x96xf32> to vector<2x32xf32>
    %44 = arith.addf %42, %43 : vector<2x32xf32>
    %45 = arith.negf %44 : vector<2x32xf32>
    %46 = math.exp %45 : vector<2x32xf32>
    %cst_15 = arith.constant 1.000000e+00 : f32
    %47 = vector.broadcast %cst_15 : f32 to vector<2x32xf32>
    %48 = arith.addf %47, %46 : vector<2x32xf32>
    %49 = arith.divf %47, %48 : vector<2x32xf32>
    %50 = vector.extract_strided_slice %40 {offsets = [0, 32], sizes = [2, 32], strides = [1, 1]} : vector<2x96xf32> to vector<2x32xf32>
    %51 = vector.extract_strided_slice %41 {offsets = [0, 32], sizes = [2, 32], strides = [1, 1]} : vector<2x96xf32> to vector<2x32xf32>
    %52 = arith.addf %50, %51 : vector<2x32xf32>
    %53 = arith.negf %52 : vector<2x32xf32>
    %54 = math.exp %53 : vector<2x32xf32>
    %cst_16 = arith.constant 1.000000e+00 : f32
    %55 = vector.broadcast %cst_16 : f32 to vector<2x32xf32>
    %56 = arith.addf %55, %54 : vector<2x32xf32>
    %57 = arith.divf %55, %56 : vector<2x32xf32>
    %58 = vector.extract_strided_slice %40 {offsets = [0, 64], sizes = [2, 32], strides = [1, 1]} : vector<2x96xf32> to vector<2x32xf32>
    %59 = vector.extract_strided_slice %41 {offsets = [0, 64], sizes = [2, 32], strides = [1, 1]} : vector<2x96xf32> to vector<2x32xf32>
    %60 = arith.addf %59, %9 : vector<2x32xf32>
    %61 = arith.mulf %49, %60 : vector<2x32xf32>
    %62 = arith.addf %58, %61 : vector<2x32xf32>
    %63 = math.tanh %62 : vector<2x32xf32>
    %cst_17 = arith.constant 1.000000e+00 : f32
    %64 = vector.broadcast %cst_17 : f32 to vector<2x32xf32>
    %65 = arith.subf %64, %57 : vector<2x32xf32>
    %66 = arith.mulf %65, %63 : vector<2x32xf32>
    %67 = arith.mulf %57, %39 : vector<2x32xf32>
    %68 = arith.addf %66, %67 : vector<2x32xf32>
    %69 = vector.extract_strided_slice %5 {offsets = [4, 0], sizes = [2, 96], strides = [1, 1]} : vector<16x96xf32> to vector<2x96xf32>
    %cst_18 = arith.constant dense<0.000000e+00> : vector<2x96xf32>
    %70 = tpu.matmul %68, %6, %cst_18 {dimension_numbers = #tpu.dot_dimension_numbers<[1], [0], [0], [1], [0, 0, 1, 1], [], []>} : vector<2x32xf32>, vector<32x96xf32>, vector<2x96xf32> -> vector<2x96xf32>
    %71 = vector.extract_strided_slice %69 {offsets = [0, 0], sizes = [2, 32], strides = [1, 1]} : vector<2x96xf32> to vector<2x32xf32>
    %72 = vector.extract_strided_slice %70 {offsets = [0, 0], sizes = [2, 32], strides = [1, 1]} : vector<2x96xf32> to vector<2x32xf32>
    %73 = arith.addf %71, %72 : vector<2x32xf32>
    %74 = arith.negf %73 : vector<2x32xf32>
    %75 = math.exp %74 : vector<2x32xf32>
    %cst_19 = arith.constant 1.000000e+00 : f32
    %76 = vector.broadcast %cst_19 : f32 to vector<2x32xf32>
    %77 = arith.addf %76, %75 : vector<2x32xf32>
    %78 = arith.divf %76, %77 : vector<2x32xf32>
    %79 = vector.extract_strided_slice %69 {offsets = [0, 32], sizes = [2, 32], strides = [1, 1]} : vector<2x96xf32> to vector<2x32xf32>
    %80 = vector.extract_strided_slice %70 {offsets = [0, 32], sizes = [2, 32], strides = [1, 1]} : vector<2x96xf32> to vector<2x32xf32>
    %81 = arith.addf %79, %80 : vector<2x32xf32>
    %82 = arith.negf %81 : vector<2x32xf32>
    %83 = math.exp %82 : vector<2x32xf32>
    %cst_20 = arith.constant 1.000000e+00 : f32
    %84 = vector.broadcast %cst_20 : f32 to vector<2x32xf32>
    %85 = arith.addf %84, %83 : vector<2x32xf32>
    %86 = arith.divf %84, %85 : vector<2x32xf32>
    %87 = vector.extract_strided_slice %69 {offsets = [0, 64], sizes = [2, 32], strides = [1, 1]} : vector<2x96xf32> to vector<2x32xf32>
    %88 = vector.extract_strided_slice %70 {offsets = [0, 64], sizes = [2, 32], strides = [1, 1]} : vector<2x96xf32> to vector<2x32xf32>
    %89 = arith.addf %88, %9 : vector<2x32xf32>
    %90 = arith.mulf %78, %89 : vector<2x32xf32>
    %91 = arith.addf %87, %90 : vector<2x32xf32>
    %92 = math.tanh %91 : vector<2x32xf32>
    %cst_21 = arith.constant 1.000000e+00 : f32
    %93 = vector.broadcast %cst_21 : f32 to vector<2x32xf32>
    %94 = arith.subf %93, %86 : vector<2x32xf32>
    %95 = arith.mulf %94, %92 : vector<2x32xf32>
    %96 = arith.mulf %86, %68 : vector<2x32xf32>
    %97 = arith.addf %95, %96 : vector<2x32xf32>
    %98 = vector.extract_strided_slice %5 {offsets = [6, 0], sizes = [2, 96], strides = [1, 1]} : vector<16x96xf32> to vector<2x96xf32>
    %cst_22 = arith.constant dense<0.000000e+00> : vector<2x96xf32>
    %99 = tpu.matmul %97, %6, %cst_22 {dimension_numbers = #tpu.dot_dimension_numbers<[1], [0], [0], [1], [0, 0, 1, 1], [], []>} : vector<2x32xf32>, vector<32x96xf32>, vector<2x96xf32> -> vector<2x96xf32>
    %100 = vector.extract_strided_slice %98 {offsets = [0, 0], sizes = [2, 32], strides = [1, 1]} : vector<2x96xf32> to vector<2x32xf32>
    %101 = vector.extract_strided_slice %99 {offsets = [0, 0], sizes = [2, 32], strides = [1, 1]} : vector<2x96xf32> to vector<2x32xf32>
    %102 = arith.addf %100, %101 : vector<2x32xf32>
    %103 = arith.negf %102 : vector<2x32xf32>
    %104 = math.exp %103 : vector<2x32xf32>
    %cst_23 = arith.constant 1.000000e+00 : f32
    %105 = vector.broadcast %cst_23 : f32 to vector<2x32xf32>
    %106 = arith.addf %105, %104 : vector<2x32xf32>
    %107 = arith.divf %105, %106 : vector<2x32xf32>
    %108 = vector.extract_strided_slice %98 {offsets = [0, 32], sizes = [2, 32], strides = [1, 1]} : vector<2x96xf32> to vector<2x32xf32>
    %109 = vector.extract_strided_slice %99 {offsets = [0, 32], sizes = [2, 32], strides = [1, 1]} : vector<2x96xf32> to vector<2x32xf32>
    %110 = arith.addf %108, %109 : vector<2x32xf32>
    %111 = arith.negf %110 : vector<2x32xf32>
    %112 = math.exp %111 : vector<2x32xf32>
    %cst_24 = arith.constant 1.000000e+00 : f32
    %113 = vector.broadcast %cst_24 : f32 to vector<2x32xf32>
    %114 = arith.addf %113, %112 : vector<2x32xf32>
    %115 = arith.divf %113, %114 : vector<2x32xf32>
    %116 = vector.extract_strided_slice %98 {offsets = [0, 64], sizes = [2, 32], strides = [1, 1]} : vector<2x96xf32> to vector<2x32xf32>
    %117 = vector.extract_strided_slice %99 {offsets = [0, 64], sizes = [2, 32], strides = [1, 1]} : vector<2x96xf32> to vector<2x32xf32>
    %118 = arith.addf %117, %9 : vector<2x32xf32>
    %119 = arith.mulf %107, %118 : vector<2x32xf32>
    %120 = arith.addf %116, %119 : vector<2x32xf32>
    %121 = math.tanh %120 : vector<2x32xf32>
    %cst_25 = arith.constant 1.000000e+00 : f32
    %122 = vector.broadcast %cst_25 : f32 to vector<2x32xf32>
    %123 = arith.subf %122, %115 : vector<2x32xf32>
    %124 = arith.mulf %123, %121 : vector<2x32xf32>
    %125 = arith.mulf %115, %97 : vector<2x32xf32>
    %126 = arith.addf %124, %125 : vector<2x32xf32>
    %127 = vector.extract_strided_slice %5 {offsets = [8, 0], sizes = [2, 96], strides = [1, 1]} : vector<16x96xf32> to vector<2x96xf32>
    %cst_26 = arith.constant dense<0.000000e+00> : vector<2x96xf32>
    %128 = tpu.matmul %126, %6, %cst_26 {dimension_numbers = #tpu.dot_dimension_numbers<[1], [0], [0], [1], [0, 0, 1, 1], [], []>} : vector<2x32xf32>, vector<32x96xf32>, vector<2x96xf32> -> vector<2x96xf32>
    %129 = vector.extract_strided_slice %127 {offsets = [0, 0], sizes = [2, 32], strides = [1, 1]} : vector<2x96xf32> to vector<2x32xf32>
    %130 = vector.extract_strided_slice %128 {offsets = [0, 0], sizes = [2, 32], strides = [1, 1]} : vector<2x96xf32> to vector<2x32xf32>
    %131 = arith.addf %129, %130 : vector<2x32xf32>
    %132 = arith.negf %131 : vector<2x32xf32>
    %133 = math.exp %132 : vector<2x32xf32>
    %cst_27 = arith.constant 1.000000e+00 : f32
    %134 = vector.broadcast %cst_27 : f32 to vector<2x32xf32>
    %135 = arith.addf %134, %133 : vector<2x32xf32>
    %136 = arith.divf %134, %135 : vector<2x32xf32>
    %137 = vector.extract_strided_slice %127 {offsets = [0, 32], sizes = [2, 32], strides = [1, 1]} : vector<2x96xf32> to vector<2x32xf32>
    %138 = vector.extract_strided_slice %128 {offsets = [0, 32], sizes = [2, 32], strides = [1, 1]} : vector<2x96xf32> to vector<2x32xf32>
    %139 = arith.addf %137, %138 : vector<2x32xf32>
    %140 = arith.negf %139 : vector<2x32xf32>
    %141 = math.exp %140 : vector<2x32xf32>
    %cst_28 = arith.constant 1.000000e+00 : f32
    %142 = vector.broadcast %cst_28 : f32 to vector<2x32xf32>
    %143 = arith.addf %142, %141 : vector<2x32xf32>
    %144 = arith.divf %142, %143 : vector<2x32xf32>
    %145 = vector.extract_strided_slice %127 {offsets = [0, 64], sizes = [2, 32], strides = [1, 1]} : vector<2x96xf32> to vector<2x32xf32>
    %146 = vector.extract_strided_slice %128 {offsets = [0, 64], sizes = [2, 32], strides = [1, 1]} : vector<2x96xf32> to vector<2x32xf32>
    %147 = arith.addf %146, %9 : vector<2x32xf32>
    %148 = arith.mulf %136, %147 : vector<2x32xf32>
    %149 = arith.addf %145, %148 : vector<2x32xf32>
    %150 = math.tanh %149 : vector<2x32xf32>
    %cst_29 = arith.constant 1.000000e+00 : f32
    %151 = vector.broadcast %cst_29 : f32 to vector<2x32xf32>
    %152 = arith.subf %151, %144 : vector<2x32xf32>
    %153 = arith.mulf %152, %150 : vector<2x32xf32>
    %154 = arith.mulf %144, %126 : vector<2x32xf32>
    %155 = arith.addf %153, %154 : vector<2x32xf32>
    %156 = vector.extract_strided_slice %5 {offsets = [10, 0], sizes = [2, 96], strides = [1, 1]} : vector<16x96xf32> to vector<2x96xf32>
    %cst_30 = arith.constant dense<0.000000e+00> : vector<2x96xf32>
    %157 = tpu.matmul %155, %6, %cst_30 {dimension_numbers = #tpu.dot_dimension_numbers<[1], [0], [0], [1], [0, 0, 1, 1], [], []>} : vector<2x32xf32>, vector<32x96xf32>, vector<2x96xf32> -> vector<2x96xf32>
    %158 = vector.extract_strided_slice %156 {offsets = [0, 0], sizes = [2, 32], strides = [1, 1]} : vector<2x96xf32> to vector<2x32xf32>
    %159 = vector.extract_strided_slice %157 {offsets = [0, 0], sizes = [2, 32], strides = [1, 1]} : vector<2x96xf32> to vector<2x32xf32>
    %160 = arith.addf %158, %159 : vector<2x32xf32>
    %161 = arith.negf %160 : vector<2x32xf32>
    %162 = math.exp %161 : vector<2x32xf32>
    %cst_31 = arith.constant 1.000000e+00 : f32
    %163 = vector.broadcast %cst_31 : f32 to vector<2x32xf32>
    %164 = arith.addf %163, %162 : vector<2x32xf32>
    %165 = arith.divf %163, %164 : vector<2x32xf32>
    %166 = vector.extract_strided_slice %156 {offsets = [0, 32], sizes = [2, 32], strides = [1, 1]} : vector<2x96xf32> to vector<2x32xf32>
    %167 = vector.extract_strided_slice %157 {offsets = [0, 32], sizes = [2, 32], strides = [1, 1]} : vector<2x96xf32> to vector<2x32xf32>
    %168 = arith.addf %166, %167 : vector<2x32xf32>
    %169 = arith.negf %168 : vector<2x32xf32>
    %170 = math.exp %169 : vector<2x32xf32>
    %cst_32 = arith.constant 1.000000e+00 : f32
    %171 = vector.broadcast %cst_32 : f32 to vector<2x32xf32>
    %172 = arith.addf %171, %170 : vector<2x32xf32>
    %173 = arith.divf %171, %172 : vector<2x32xf32>
    %174 = vector.extract_strided_slice %156 {offsets = [0, 64], sizes = [2, 32], strides = [1, 1]} : vector<2x96xf32> to vector<2x32xf32>
    %175 = vector.extract_strided_slice %157 {offsets = [0, 64], sizes = [2, 32], strides = [1, 1]} : vector<2x96xf32> to vector<2x32xf32>
    %176 = arith.addf %175, %9 : vector<2x32xf32>
    %177 = arith.mulf %165, %176 : vector<2x32xf32>
    %178 = arith.addf %174, %177 : vector<2x32xf32>
    %179 = math.tanh %178 : vector<2x32xf32>
    %cst_33 = arith.constant 1.000000e+00 : f32
    %180 = vector.broadcast %cst_33 : f32 to vector<2x32xf32>
    %181 = arith.subf %180, %173 : vector<2x32xf32>
    %182 = arith.mulf %181, %179 : vector<2x32xf32>
    %183 = arith.mulf %173, %155 : vector<2x32xf32>
    %184 = arith.addf %182, %183 : vector<2x32xf32>
    %185 = vector.extract_strided_slice %5 {offsets = [12, 0], sizes = [2, 96], strides = [1, 1]} : vector<16x96xf32> to vector<2x96xf32>
    %cst_34 = arith.constant dense<0.000000e+00> : vector<2x96xf32>
    %186 = tpu.matmul %184, %6, %cst_34 {dimension_numbers = #tpu.dot_dimension_numbers<[1], [0], [0], [1], [0, 0, 1, 1], [], []>} : vector<2x32xf32>, vector<32x96xf32>, vector<2x96xf32> -> vector<2x96xf32>
    %187 = vector.extract_strided_slice %185 {offsets = [0, 0], sizes = [2, 32], strides = [1, 1]} : vector<2x96xf32> to vector<2x32xf32>
    %188 = vector.extract_strided_slice %186 {offsets = [0, 0], sizes = [2, 32], strides = [1, 1]} : vector<2x96xf32> to vector<2x32xf32>
    %189 = arith.addf %187, %188 : vector<2x32xf32>
    %190 = arith.negf %189 : vector<2x32xf32>
    %191 = math.exp %190 : vector<2x32xf32>
    %cst_35 = arith.constant 1.000000e+00 : f32
    %192 = vector.broadcast %cst_35 : f32 to vector<2x32xf32>
    %193 = arith.addf %192, %191 : vector<2x32xf32>
    %194 = arith.divf %192, %193 : vector<2x32xf32>
    %195 = vector.extract_strided_slice %185 {offsets = [0, 32], sizes = [2, 32], strides = [1, 1]} : vector<2x96xf32> to vector<2x32xf32>
    %196 = vector.extract_strided_slice %186 {offsets = [0, 32], sizes = [2, 32], strides = [1, 1]} : vector<2x96xf32> to vector<2x32xf32>
    %197 = arith.addf %195, %196 : vector<2x32xf32>
    %198 = arith.negf %197 : vector<2x32xf32>
    %199 = math.exp %198 : vector<2x32xf32>
    %cst_36 = arith.constant 1.000000e+00 : f32
    %200 = vector.broadcast %cst_36 : f32 to vector<2x32xf32>
    %201 = arith.addf %200, %199 : vector<2x32xf32>
    %202 = arith.divf %200, %201 : vector<2x32xf32>
    %203 = vector.extract_strided_slice %185 {offsets = [0, 64], sizes = [2, 32], strides = [1, 1]} : vector<2x96xf32> to vector<2x32xf32>
    %204 = vector.extract_strided_slice %186 {offsets = [0, 64], sizes = [2, 32], strides = [1, 1]} : vector<2x96xf32> to vector<2x32xf32>
    %205 = arith.addf %204, %9 : vector<2x32xf32>
    %206 = arith.mulf %194, %205 : vector<2x32xf32>
    %207 = arith.addf %203, %206 : vector<2x32xf32>
    %208 = math.tanh %207 : vector<2x32xf32>
    %cst_37 = arith.constant 1.000000e+00 : f32
    %209 = vector.broadcast %cst_37 : f32 to vector<2x32xf32>
    %210 = arith.subf %209, %202 : vector<2x32xf32>
    %211 = arith.mulf %210, %208 : vector<2x32xf32>
    %212 = arith.mulf %202, %184 : vector<2x32xf32>
    %213 = arith.addf %211, %212 : vector<2x32xf32>
    %214 = vector.extract_strided_slice %5 {offsets = [14, 0], sizes = [2, 96], strides = [1, 1]} : vector<16x96xf32> to vector<2x96xf32>
    %cst_38 = arith.constant dense<0.000000e+00> : vector<2x96xf32>
    %215 = tpu.matmul %213, %6, %cst_38 {dimension_numbers = #tpu.dot_dimension_numbers<[1], [0], [0], [1], [0, 0, 1, 1], [], []>} : vector<2x32xf32>, vector<32x96xf32>, vector<2x96xf32> -> vector<2x96xf32>
    %216 = vector.extract_strided_slice %214 {offsets = [0, 0], sizes = [2, 32], strides = [1, 1]} : vector<2x96xf32> to vector<2x32xf32>
    %217 = vector.extract_strided_slice %215 {offsets = [0, 0], sizes = [2, 32], strides = [1, 1]} : vector<2x96xf32> to vector<2x32xf32>
    %218 = arith.addf %216, %217 : vector<2x32xf32>
    %219 = arith.negf %218 : vector<2x32xf32>
    %220 = math.exp %219 : vector<2x32xf32>
    %cst_39 = arith.constant 1.000000e+00 : f32
    %221 = vector.broadcast %cst_39 : f32 to vector<2x32xf32>
    %222 = arith.addf %221, %220 : vector<2x32xf32>
    %223 = arith.divf %221, %222 : vector<2x32xf32>
    %224 = vector.extract_strided_slice %214 {offsets = [0, 32], sizes = [2, 32], strides = [1, 1]} : vector<2x96xf32> to vector<2x32xf32>
    %225 = vector.extract_strided_slice %215 {offsets = [0, 32], sizes = [2, 32], strides = [1, 1]} : vector<2x96xf32> to vector<2x32xf32>
    %226 = arith.addf %224, %225 : vector<2x32xf32>
    %227 = arith.negf %226 : vector<2x32xf32>
    %228 = math.exp %227 : vector<2x32xf32>
    %cst_40 = arith.constant 1.000000e+00 : f32
    %229 = vector.broadcast %cst_40 : f32 to vector<2x32xf32>
    %230 = arith.addf %229, %228 : vector<2x32xf32>
    %231 = arith.divf %229, %230 : vector<2x32xf32>
    %232 = vector.extract_strided_slice %214 {offsets = [0, 64], sizes = [2, 32], strides = [1, 1]} : vector<2x96xf32> to vector<2x32xf32>
    %233 = vector.extract_strided_slice %215 {offsets = [0, 64], sizes = [2, 32], strides = [1, 1]} : vector<2x96xf32> to vector<2x32xf32>
    %234 = arith.addf %233, %9 : vector<2x32xf32>
    %235 = arith.mulf %223, %234 : vector<2x32xf32>
    %236 = arith.addf %232, %235 : vector<2x32xf32>
    %237 = math.tanh %236 : vector<2x32xf32>
    %cst_41 = arith.constant 1.000000e+00 : f32
    %238 = vector.broadcast %cst_41 : f32 to vector<2x32xf32>
    %239 = arith.subf %238, %231 : vector<2x32xf32>
    %240 = arith.mulf %239, %237 : vector<2x32xf32>
    %241 = arith.mulf %231, %213 : vector<2x32xf32>
    %242 = arith.addf %240, %241 : vector<2x32xf32>
    %243 = vector.extract_strided_slice %39 {offsets = [0, 0], sizes = [2, 16], strides = [1, 1]} : vector<2x32xf32> to vector<2x16xf32>
    %244 = vector.extract_strided_slice %68 {offsets = [0, 0], sizes = [2, 16], strides = [1, 1]} : vector<2x32xf32> to vector<2x16xf32>
    %245 = vector.extract_strided_slice %97 {offsets = [0, 0], sizes = [2, 16], strides = [1, 1]} : vector<2x32xf32> to vector<2x16xf32>
    %246 = vector.extract_strided_slice %126 {offsets = [0, 0], sizes = [2, 16], strides = [1, 1]} : vector<2x32xf32> to vector<2x16xf32>
    %247 = vector.extract_strided_slice %155 {offsets = [0, 0], sizes = [2, 16], strides = [1, 1]} : vector<2x32xf32> to vector<2x16xf32>
    %248 = vector.extract_strided_slice %184 {offsets = [0, 0], sizes = [2, 16], strides = [1, 1]} : vector<2x32xf32> to vector<2x16xf32>
    %249 = vector.extract_strided_slice %213 {offsets = [0, 0], sizes = [2, 16], strides = [1, 1]} : vector<2x32xf32> to vector<2x16xf32>
    %250 = vector.extract_strided_slice %242 {offsets = [0, 0], sizes = [2, 16], strides = [1, 1]} : vector<2x32xf32> to vector<2x16xf32>
    %251 = tpu.concatenate %243, %244, %245, %246, %247, %248, %249, %250 in 0 : vector<2x16xf32>, vector<2x16xf32>, vector<2x16xf32>, vector<2x16xf32>, vector<2x16xf32>, vector<2x16xf32>, vector<2x16xf32>, vector<2x16xf32> -> vector<16x16xf32>
    %252 = vector.extract_strided_slice %242 {offsets = [0, 16], sizes = [2, 16], strides = [1, 1]} : vector<2x32xf32> to vector<2x16xf32>
    %253 = vector.extract_strided_slice %213 {offsets = [0, 16], sizes = [2, 16], strides = [1, 1]} : vector<2x32xf32> to vector<2x16xf32>
    %254 = vector.extract_strided_slice %184 {offsets = [0, 16], sizes = [2, 16], strides = [1, 1]} : vector<2x32xf32> to vector<2x16xf32>
    %255 = vector.extract_strided_slice %155 {offsets = [0, 16], sizes = [2, 16], strides = [1, 1]} : vector<2x32xf32> to vector<2x16xf32>
    %256 = vector.extract_strided_slice %126 {offsets = [0, 16], sizes = [2, 16], strides = [1, 1]} : vector<2x32xf32> to vector<2x16xf32>
    %257 = vector.extract_strided_slice %97 {offsets = [0, 16], sizes = [2, 16], strides = [1, 1]} : vector<2x32xf32> to vector<2x16xf32>
    %258 = vector.extract_strided_slice %68 {offsets = [0, 16], sizes = [2, 16], strides = [1, 1]} : vector<2x32xf32> to vector<2x16xf32>
    %259 = vector.extract_strided_slice %39 {offsets = [0, 16], sizes = [2, 16], strides = [1, 1]} : vector<2x32xf32> to vector<2x16xf32>
    %260 = tpu.concatenate %252, %253, %254, %255, %256, %257, %258, %259 in 0 : vector<2x16xf32>, vector<2x16xf32>, vector<2x16xf32>, vector<2x16xf32>, vector<2x16xf32>, vector<2x16xf32>, vector<2x16xf32>, vector<2x16xf32> -> vector<16x16xf32>
    %261 = tpu.concatenate %251, %260 in 1 : vector<16x16xf32>, vector<16x16xf32> -> vector<16x32xf32>
    %c0_42 = arith.constant 0 : index
    %c0_43 = arith.constant 0 : index
    %262 = vector.load %arg5[%c0_42, %c0_43] : memref<32x8xf32, #tpu.memory_space<vmem>>, vector<32x8xf32>
    %cst_44 = arith.constant dense<0.000000e+00> : vector<16x8xf32>
    %263 = tpu.matmul %261, %262, %cst_44 {dimension_numbers = #tpu.dot_dimension_numbers<[1], [0], [0], [1], [0, 0, 1, 1], [], []>} : vector<16x32xf32>, vector<32x8xf32>, vector<16x8xf32> -> vector<16x8xf32>
    %c0_45 = arith.constant 0 : index
    %c0_46 = arith.constant 0 : index
    %264 = vector.load %arg6[%c0_45, %c0_46] : memref<1x8xf32, #tpu.memory_space<vmem>>, vector<1x8xf32>
    %265 = vector.broadcast %264 : vector<1x8xf32> to vector<16x8xf32>
    %266 = arith.addf %263, %265 : vector<16x8xf32>
    %267 = math.tanh %266 : vector<16x8xf32>
    %c0_47 = arith.constant 0 : index
    %c0_48 = arith.constant 0 : index
    %268 = vector.load %arg8[%c0_47, %c0_48] : memref<16x8xf32, #tpu.memory_space<vmem>>, vector<16x8xf32>
    tpu.vector_store %arg8[%c0_47, %c0_48], %267 {strides = array<i32>} : memref<16x8xf32, #tpu.memory_space<vmem>>, vector<16x8xf32>,
    %c0_49 = arith.constant 0 : index
    %c0_50 = arith.constant 0 : index
    %269 = vector.load %arg7[%c0_49, %c0_50] : memref<8x1xf32, #tpu.memory_space<vmem>>, vector<8x1xf32>
    %cst_51 = arith.constant dense<0.000000e+00> : vector<16x1xf32>
    %270 = tpu.matmul %267, %269, %cst_51 {dimension_numbers = #tpu.dot_dimension_numbers<[1], [0], [0], [1], [0, 0, 1, 1], [], []>} : vector<16x8xf32>, vector<8x1xf32>, vector<16x1xf32> -> vector<16x1xf32>
    %c0_52 = arith.constant 0 : index
    %c0_53 = arith.constant 0 : index
    %271 = vector.load %arg9[%c0_52, %c0_53] : memref<16x1xf32, #tpu.memory_space<vmem>>, vector<16x1xf32>
    tpu.vector_store %arg9[%c0_52, %c0_53], %270 {strides = array<i32>} : memref<16x1xf32, #tpu.memory_space<vmem>>, vector<16x1xf32>,
    return
  }
}

</mosaic_0001>

<bundles_post_ra>
// kernel: tpu_custom_call.1
= control target key start
LH: loop header
LB: loop body
LE: loop exit
PB: predicated region body
PF: predicated region fallthrough
CT: control target
= control target key end

     0   :  { %15 = vsyncpa [#allocation3], 0  ;;  %s1195_s0 = inlined_call_operand.hbm [shape: f32[16,16], index: 0, kind: input, shape index: {}]   ;;  %s1196_s1 = inlined_call_operand.hbm [shape: f32[16,96], index: 1, kind: input, shape index: {}]   ;;  %s1197_s2 = inlined_call_operand.vmem [shape: f32[32,96], index: 2, kind: input, shape index: {}]   ;;  %s1198_s3 = inlined_call_operand.vmem [shape: f32[1,96], index: 3, kind: input, shape index: {}]   ;;  %s1199_s4 = inlined_call_operand.vmem [shape: f32[1,32], index: 4, kind: input, shape index: {}]   ;;  %s1200_s5 = inlined_call_operand.vmem [shape: f32[32,8], index: 5, kind: input, shape index: {}]   ;;  %s1201_s6 = inlined_call_operand.vmem [shape: f32[1,8], index: 6, kind: input, shape index: {}]   ;;  %s1202_s7 = inlined_call_operand.vmem [shape: f32[8,1], index: 7, kind: input, shape index: {}]   ;;  %s1203_s8 = inlined_call_operand.vmem [shape: f32[16,8], index: 8, kind: output, shape index: {0}]   ;;  %s1204_s9 = inlined_call_operand.vmem [shape: f32[16,1], index: 9, kind: output, shape index: {1}]  }
   0x1   :  { %s21_s11 = sshll.u32 %s1195_s0, 4  ;;  %s22_s11 = int_to_ptr.hbm [resolvable:$true] %s21_s11 }
   0x2   :  { %16 = vsyncpa [#allocation5], 0  ;;  %s936_s12 = smov [#allocation2]   ;;  %s34_s16 = sshll.u32 %s1196_s1, 4  ;;  %s35_s16 = int_to_ptr.hbm [resolvable:$true] %s34_s16 }
   0x3   :  { %s23_s13 = sshll.u32 %s936_s12, 4  ;;  %s937_s17 = smov 128   ;;  %s24_s13 = int_to_ptr.vmem [resolvable:$true] %s23_s13 }
   0x4   :  { %s938_s18 = smov 8   ;;  %s939_s19 = smov [#allocation4]  }
   0x5   :  { %29 = dma.hbm_to_vmem [thread:$0]  %s22_s11, 256, %s24_s13, [#allocation3], %s937_s17, %s937_s17, %s938_s18  }
   0x6   :  { %s36_s20 = sshll.u32 %s939_s19, 4  ;;  %s37_s20 = int_to_ptr.vmem [resolvable:$true] %s36_s20 }
   0x7   :  { %42 = dma.hbm_to_vmem [thread:$0]  %s35_s16, 256, %s37_s20, [#allocation5], %s937_s17, %s937_s17, %s938_s18  }
   0x8   :  { %932 = dma.done.wait [#allocation3], 256  }
   0x9   :  { %933 = vsyncadd [#allocation3], 4294967040 }
   0xa   :  { %934 = dma.done.wait [#allocation5], 256  }
   0xb   :  { %935 = vsyncadd [#allocation5], 4294967040  ;;  %v104_v0 = vld [vmem:[%s1197_s2 + $0x18] sm:$0xff]  ;;  %v103_v2 = vld [vmem:[%s1197_s2 + $0x10] sm:$0xff]  ;;  %vm71_vm0 = vcmask 130048   ;;  %s940_s29 = smov 64  }
   0xc   :  { %v66_v1 = vld [vmem:[#allocation4 + $0x8] sm:$0xff]  ;;  %124 = vmatpush.msra.mxu1 %v104_v0  ;;  %v65_v3 = vld [vmem:[#allocation4] sm:$0xff]  ;;  %v63_v4 = vld [vmem:[#allocation2] sm:$0xff]  ;;  %264 = vmatpush.msra.mxu3 %v104_v0  ;;  %v941_v8 = vmov 0.0   ;;  %vm108_vm5 = vcmask 261120   ;;  %vm672_vm14 = vcmask 1041408  }
   0xd   :  { %92 = vmatpush.msra.mxu0 %v66_v1  ;;  %v102_v5 = vld [vmem:[%s1197_s2 + $0x8] sm:$0xff]  ;;  %v829_v6 = vld [vmem:[%s1199_s4] ss:$0 sm:$0xff]  ;;  %408 = vmatpush.msra.mxu2 %v104_v0  ;;  %vm674_vm15 = vcmask 1043456  }
   0xe   :  { %125 = vmatpush.msra.mxu1 %v103_v2  ;;  %v101_v7 = vld [vmem:[%s1197_s2] sm:$0xff]  ;;  %152 = vrot.lane.b32.xlu0 %v829_v6, %s940_s29  ;;  %v64_v34 = vld [vmem:[#allocation2 + $0x8] sm:$0xff] }
   0xf   :  { %93 = vmatpush.msra.mxu0 %v65_v3  ;;  %265 = vmatpush.msra.mxu3 %v103_v2  ;;  %v1023_v12 = vld [vmem:[%s1198_s3] ss:$0 sm:$0xff]  ;;  %s942_s3 = smov 96  }
  0x10   :  { %801 = vmatmul.msk.f32.vlgmr.msra.gmra.mxu0 %vm71_vm0, %v63_v4  ;;  %126 = vmatpush.msra.mxu1 %v102_v5 }
  0x11   :  { %192 = vmatpush.msrb.mxu0 %v104_v0  ;;  %409 = vmatpush.msra.mxu2 %v103_v2 }
  0x12   :  { %127 = vmatpush.msra.mxu1 %v101_v7  ;;  %266 = vmatpush.msra.mxu3 %v102_v5 }
  0x13   :  { %193 = vmatpush.msrb.mxu0 %v103_v2  ;;  %128 = vmatmul.f32.vlgmr.msra.gmra.mxu1 %v941_v8 }
  0x14   :  { %336 = vmatpush.msrb.mxu1 %v104_v0  ;;  %267 = vmatpush.msra.mxu3 %v101_v7 }
  0x15   :  { %194 = vmatpush.msrb.mxu0 %v102_v5  ;;  %410 = vmatpush.msra.mxu2 %v102_v5 }
  0x16   :  { %337 = vmatpush.msrb.mxu1 %v103_v2  ;;  %474 = vmatpush.msrb.mxu3 %v104_v0 }
  0x17   :  { %195 = vmatpush.msrb.mxu0 %v101_v7  ;;  %411 = vmatpush.msra.mxu2 %v101_v7 }
  0x18   :  { %338 = vmatpush.msrb.mxu1 %v102_v5  ;;  %475 = vmatpush.msrb.mxu3 %v103_v2 }
  0x19   :  { %546 = vmatpush.msra.mxu0 %v104_v0 }
  0x1a   :  { %339 = vmatpush.msrb.mxu1 %v101_v7  ;;  %476 = vmatpush.msrb.mxu3 %v102_v5 }
  0x1b   :  { %547 = vmatpush.msra.mxu0 %v103_v2 }
  0x1c   :  { %618 = vmatpush.msra.mxu1 %v104_v0  ;;  %477 = vmatpush.msrb.mxu3 %v101_v7 }
  0x1d   :  { %548 = vmatpush.msra.mxu0 %v102_v5 }
  0x1e   :  { %619 = vmatpush.msra.mxu1 %v103_v2  ;;  %802 = vmatmul.msk.f32.gmra.mxu0 %vm71_vm0, %v64_v34 }
  0x1f   :  { %549 = vmatpush.msra.mxu0 %v101_v7 }
  0x20   :  { %620 = vmatpush.msra.mxu1 %v102_v5 }
  0x22   :  { %621 = vmatpush.msra.mxu1 %v101_v7 }
  0x80   :  { %v1016_v9 = vpop.permute.xlu0 %152 }
  0x8d   :  { %v95_v13 = vpop.f32.mrf.mxu0 }
  0x8e   :  { %v1026_v14 = vadd.f32 %v1023_v12, %v95_v13 }
  0x90   :  { %v129_v10 = vpop.f32.mrf.mxu1 }
  0x91   :  { %v155_v11 = vadd.f32 %v1016_v9, %v129_v10  ;;  %v132_v15 = vadd.f32 %v129_v10, %v1026_v14 }
  0x93   :  { %157 = vrot.lane.b32.xlu0 %v155_v11, %s940_s29  ;;  %v803_v16 = vmul.f32 -1.442695, %v132_v15 }
  0x95   :  { %832 = vpow2.f32 %v803_v16 }
  0x9b   :  { %v833_v17 = vpop.eup %832  ;;  %v1038_v41 = vpop.f32.mrf.mxu0 }
  0x9c   :  { %v136_v18 = vadd.f32 1.0, %v833_v17 }
  0x9e   :  { %834 = vrcp.f32 %v136_v18  ;;  %v148_v24 = vand.u32 2147483648, %v136_v18  ;;  %vm142_vm2 = vweird.f32 %v136_v18  ;;  %v146_v25 = vand.u32 2147483647, %v136_v18 }
  0xa0   :  { %v149_v27 = vor.u32 1.1754944e-38, %v148_v24  ;;  %vm147_vm4 = vcmp.eq.f32.partialorder %v146_v25, 8.507059e+37 }
  0xa4   :  { %v835_v19 = vpop.eup %834 }
  0xa5   :  { %v138_v20 = vmul.f32 %v835_v19, %v136_v18  ;;  %vm143_vm1 = vweird.f32 %v835_v19 }
  0xa6   :  { %vm144_vm3 = vmor %vm142_vm2, %vm143_vm1 }
  0xa7   :  { %v139_v21 = vsub.f32 1.0, %v138_v20 }
  0xa9   :  { %v140_v22 = vmul.f32 %v835_v19, %v139_v21 }
  0xab   :  { %v141_v23 = vadd.f32 %v835_v19, %v140_v22 }
  0xad   :  { %v145_v26 = vsel %vm144_vm3, %v835_v19, %v141_v23 }
  0xae   :  { %v150_v29 = vsel %vm147_vm4, %v149_v27, %v145_v26 }
  0xaf   :  { %v167_v35 = vsub.f32 1.0, %v150_v29  ;;  %v173_v37 = vmul.f32 0.0, %v150_v29 }
 0x105   :  { %v158_v28 = vpop.permute.xlu0 %157 }
 0x106   :  { %v160_v30 = vmul.f32 %v158_v28, %v150_v29 }
 0x108   :  { %162 = vrot.lane.b32.xlu1 %v160_v30, %s940_s29 }
 0x17a   :  { %v163_v31 = vpop.permute.xlu1 %162 }
 0x17b   :  { %v165_v32 = vadd.f32 %v163_v31, %v1026_v14 }
 0x17d   :  { %836 = vtanh.f32 %v165_v32 }
 0x183   :  { %v837_v33 = vpop.eup %836 }
 0x184   :  { %169 = vrot.lane.b32.xlu1 %v837_v33, %s942_s3 }
 0x1f6   :  { %v170_v36 = vpop.permute.xlu1 %169 }
 0x1f7   :  { %v172_v38 = vmul.f32 %v170_v36, %v167_v35 }
 0x1f9   :  { %v1033_v39 = vadd.f32 %v173_v37, %v172_v38 }
 0x1fb   :  { %176 = vrot.lane.b32.xlu2 %v1033_v39, %s942_s3  ;;  %v242_v2 = vrot.slane %v1033_v39, 6 }
 0x255   :  { %v177_v40 = vpop.permute.xlu2 %176 }
 0x256   :  { %804 = vmatmul.msk.f32.vlgmr.msrb.gmra.mxu0 %vm108_vm5, %v177_v40 }
 0x2d3   :  { %v197_v42 = vpop.f32.mrf.mxu0 }
 0x2d4   :  { %v223_v43 = vadd.f32 %v197_v42, %v1016_v9  ;;  %v201_v45 = vrot.slane %v197_v42, 6 }
 0x2d6   :  { %v225_v44 = vrot.slane %v223_v43, 6  ;;  %v203_v46 = vadd.f32 %v201_v45, %v1026_v14 }
 0x2d8   :  { %226 = vrot.lane.b32.xlu2 %v225_v44, %s940_s29  ;;  %v805_v47 = vmul.f32 -1.442695, %v203_v46 }
 0x2da   :  { %838 = vpow2.f32 %v805_v47 }
 0x2e0   :  { %v839_v48 = vpop.eup %838 }
 0x2e1   :  { %v207_v49 = vadd.f32 1.0, %v839_v48 }
 0x2e3   :  { %840 = vrcp.f32 %v207_v49  ;;  %v219_v55 = vand.u32 2147483648, %v207_v49  ;;  %vm213_vm7 = vweird.f32 %v207_v49  ;;  %v217_v56 = vand.u32 2147483647, %v207_v49 }
 0x2e5   :  { %v220_v58 = vor.u32 1.1754944e-38, %v219_v55  ;;  %vm218_vm9 = vcmp.eq.f32.partialorder %v217_v56, 8.507059e+37 }
 0x2e9   :  { %v841_v50 = vpop.eup %840 }
 0x2ea   :  { %v209_v51 = vmul.f32 %v841_v50, %v207_v49  ;;  %vm214_vm6 = vweird.f32 %v841_v50 }
 0x2eb   :  { %vm215_vm8 = vmor %vm213_vm7, %vm214_vm6  ;;  %vm676_vm6 = vcmask 1045504  }
 0x2ec   :  { %v210_v52 = vsub.f32 1.0, %v209_v51 }
 0x2ee   :  { %v211_v53 = vmul.f32 %v841_v50, %v210_v52 }
 0x2f0   :  { %v212_v54 = vadd.f32 %v841_v50, %v211_v53 }
 0x2f2   :  { %v216_v57 = vsel %vm215_vm8, %v841_v50, %v212_v54 }
 0x2f3   :  { %v221_v60 = vsel %vm218_vm9, %v220_v58, %v216_v57 }
 0x2f4   :  { %v236_v1 = vsub.f32 1.0, %v221_v60  ;;  %v244_v5 = vmul.f32 %v242_v2, %v221_v60 }
 0x332   :  { %v227_v59 = vpop.permute.xlu2 %226 }
 0x333   :  { %v229_v61 = vmul.f32 %v227_v59, %v221_v60 }
 0x335   :  { %231 = vrot.lane.b32.xlu0 %v229_v61, %s940_s29 }
 0x3a7   :  { %v232_v62 = vpop.permute.xlu0 %231 }
 0x3a8   :  { %v234_v63 = vadd.f32 %v232_v62, %v1026_v14 }
 0x3aa   :  { %842 = vtanh.f32 %v234_v63 }
 0x3b0   :  { %v843_v0 = vpop.eup %842 }
 0x3b1   :  { %238 = vrot.lane.b32.xlu1 %v843_v0, %s942_s3 }
 0x423   :  { %v239_v3 = vpop.permute.xlu1 %238 }
 0x424   :  { %v241_v4 = vmul.f32 %v239_v3, %v236_v1 }
 0x426   :  { %v1047_v6 = vadd.f32 %v244_v5, %v241_v4 }
 0x428   :  { %v247_v7 = vrot.slane %v1047_v6, 2  ;;  %v314_v36 = vrot.slane %v1047_v6, 6  ;;  %v673_v43 = vsel %vm672_vm14, %v1033_v39, %v1047_v6 }
 0x42a   :  { %248 = vrot.lane.b32.xlu2 %v247_v7, %s942_s3 }
 0x484   :  { %v249_v8 = vpop.permute.xlu2 %248 }
 0x485   :  { %806 = vmatmul.msk.f32.vlgmr.msra.gmra.mxu3 %vm108_vm5, %v249_v8 }
 0x508   :  { %v269_v10 = vpop.f32.mrf.mxu3 }
 0x509   :  { %v295_v11 = vadd.f32 %v269_v10, %v1016_v9  ;;  %v273_v15 = vrot.slane %v269_v10, 4 }
 0x50b   :  { %v297_v13 = vrot.slane %v295_v11, 4  ;;  %v275_v16 = vadd.f32 %v273_v15, %v1026_v14 }
 0x50d   :  { %298 = vrot.lane.b32.xlu0 %v297_v13, %s940_s29  ;;  %v807_v17 = vmul.f32 -1.442695, %v275_v16 }
 0x50f   :  { %844 = vpow2.f32 %v807_v17 }
 0x515   :  { %v845_v18 = vpop.eup %844 }
 0x516   :  { %v279_v19 = vadd.f32 1.0, %v845_v18 }
 0x518   :  { %846 = vrcp.f32 %v279_v19  ;;  %v291_v25 = vand.u32 2147483648, %v279_v19  ;;  %vm285_vm11 = vweird.f32 %v279_v19  ;;  %v289_v26 = vand.u32 2147483647, %v279_v19 }
 0x51a   :  { %v292_v28 = vor.u32 1.1754944e-38, %v291_v25  ;;  %vm290_vm13 = vcmp.eq.f32.partialorder %v289_v26, 8.507059e+37 }
 0x51e   :  { %v847_v20 = vpop.eup %846 }
 0x51f   :  { %v281_v21 = vmul.f32 %v847_v20, %v279_v19  ;;  %vm286_vm10 = vweird.f32 %v847_v20 }
 0x520   :  { %vm287_vm12 = vmor %vm285_vm11, %vm286_vm10 }
 0x521   :  { %v282_v22 = vsub.f32 1.0, %v281_v21 }
 0x523   :  { %v283_v23 = vmul.f32 %v847_v20, %v282_v22 }
 0x525   :  { %v284_v24 = vadd.f32 %v847_v20, %v283_v23 }
 0x527   :  { %v288_v27 = vsel %vm287_vm12, %v847_v20, %v284_v24  ;;  %v1090_v20 = vadd.f32 %v1023_v12, %v1038_v41 }
 0x528   :  { %v293_v30 = vsel %vm290_vm13, %v292_v28, %v288_v27 }
 0x529   :  { %v308_v35 = vsub.f32 1.0, %v293_v30  ;;  %v316_v38 = vmul.f32 %v314_v36, %v293_v30 }
 0x57f   :  { %v299_v29 = vpop.permute.xlu0 %298 }
 0x580   :  { %v301_v31 = vmul.f32 %v299_v29, %v293_v30 }
 0x582   :  { %303 = vrot.lane.b32.xlu1 %v301_v31, %s940_s29 }
 0x5f4   :  { %v304_v32 = vpop.permute.xlu1 %303 }
 0x5f5   :  { %v306_v33 = vadd.f32 %v304_v32, %v1026_v14 }
 0x5f7   :  { %848 = vtanh.f32 %v306_v33 }
 0x5fd   :  { %v849_v34 = vpop.eup %848 }
 0x5fe   :  { %310 = vrot.lane.b32.xlu2 %v849_v34, %s942_s3 }
 0x658   :  { %v311_v37 = vpop.permute.xlu2 %310 }
 0x659   :  { %v313_v40 = vmul.f32 %v311_v37, %v308_v35 }
 0x65b   :  { %v1061_v42 = vadd.f32 %v316_v38, %v313_v40 }
 0x65d   :  { %v319_v44 = vrot.slane %v1061_v42, 4  ;;  %v675_v45 = vsel %vm674_vm15, %v673_v43, %v1061_v42  ;;  %v386_v8 = vrot.slane %v1061_v42, 6 }
 0x65f   :  { %320 = vrot.lane.b32.xlu0 %v319_v44, %s942_s3 }
 0x6d1   :  { %v321_v46 = vpop.permute.xlu0 %320 }
 0x6d2   :  { %808 = vmatmul.msk.f32.vlgmr.msrb.gmra.mxu1 %vm108_vm5, %v321_v46 }
 0x74f   :  { %v341_v47 = vpop.f32.mrf.mxu1 }
 0x750   :  { %v367_v48 = vadd.f32 %v341_v47, %v1016_v9  ;;  %v345_v50 = vrot.slane %v341_v47, 2 }
 0x752   :  { %v369_v49 = vrot.slane %v367_v48, 2  ;;  %v347_v51 = vadd.f32 %v345_v50, %v1026_v14 }
 0x754   :  { %370 = vrot.lane.b32.xlu1 %v369_v49, %s940_s29  ;;  %v809_v52 = vmul.f32 -1.442695, %v347_v51 }
 0x756   :  { %850 = vpow2.f32 %v809_v52 }
 0x75c   :  { %v851_v53 = vpop.eup %850 }
 0x75d   :  { %v351_v54 = vadd.f32 1.0, %v851_v53 }
 0x75f   :  { %852 = vrcp.f32 %v351_v54  ;;  %v363_v60 = vand.u32 2147483648, %v351_v54  ;;  %vm357_vm2 = vweird.f32 %v351_v54  ;;  %v361_v61 = vand.u32 2147483647, %v351_v54 }
 0x761   :  { %v364_v63 = vor.u32 1.1754944e-38, %v363_v60  ;;  %vm362_vm4 = vcmp.eq.f32.partialorder %v361_v61, 8.507059e+37 }
 0x765   :  { %v853_v55 = vpop.eup %852 }
 0x766   :  { %v353_v56 = vmul.f32 %v853_v55, %v351_v54  ;;  %vm358_vm1 = vweird.f32 %v853_v55 }
 0x767   :  { %vm359_vm3 = vmor %vm357_vm2, %vm358_vm1 }
 0x768   :  { %v354_v57 = vsub.f32 1.0, %v353_v56 }
 0x76a   :  { %v355_v58 = vmul.f32 %v853_v55, %v354_v57 }
 0x76c   :  { %v356_v59 = vadd.f32 %v853_v55, %v355_v58 }
 0x76e   :  { %v360_v62 = vsel %vm359_vm3, %v853_v55, %v356_v59 }
 0x76f   :  { %v365_v1 = vsel %vm362_vm4, %v364_v63, %v360_v62 }
 0x770   :  { %v380_v7 = vsub.f32 1.0, %v365_v1  ;;  %v388_v11 = vmul.f32 %v386_v8, %v365_v1 }
 0x7c6   :  { %v371_v0 = vpop.permute.xlu1 %370 }
 0x7c7   :  { %v373_v2 = vmul.f32 %v371_v0, %v365_v1 }
 0x7c9   :  { %375 = vrot.lane.b32.xlu2 %v373_v2, %s940_s29 }
 0x823   :  { %v376_v3 = vpop.permute.xlu2 %375 }
 0x824   :  { %v378_v4 = vadd.f32 %v376_v3, %v1026_v14 }
 0x826   :  { %854 = vtanh.f32 %v378_v4 }
 0x82c   :  { %v855_v5 = vpop.eup %854 }
 0x82d   :  { %382 = vrot.lane.b32.xlu0 %v855_v5, %s942_s3 }
 0x89f   :  { %v383_v10 = vpop.permute.xlu0 %382 }
 0x8a0   :  { %v385_v13 = vmul.f32 %v383_v10, %v380_v7 }
 0x8a2   :  { %v389_v15 = vadd.f32 %v388_v11, %v385_v13 }
 0x8a4   :  { %v1078_v16 = vrot.slane %v389_v15, 6  ;;  %v1081_v17 = vsel %vm676_vm6, %v675_v45, %v389_v15 }
 0x8a6   :  { %392 = vrot.lane.b32.xlu1 %v1078_v16, %s942_s3 }
 0x918   :  { %v393_v14 = vpop.permute.xlu1 %392 }
 0x919   :  { %810 = vmatmul.msk.f32.vlgmr.msra.gmra.mxu2 %vm108_vm5, %v393_v14 }
 0x99c   :  { %v413_v18 = vpop.f32.mrf.mxu2 }
 0x99d   :  { %v436_v19 = vadd.f32 %v413_v18, %v1016_v9  ;;  %v416_v21 = vadd.f32 %v413_v18, %v1090_v20 }
 0x99f   :  { %438 = vrot.lane.b32.xlu2 %v436_v19, %s940_s29  ;;  %v811_v22 = vmul.f32 -1.442695, %v416_v21 }
 0x9a1   :  { %856 = vpow2.f32 %v811_v22 }
 0x9a7   :  { %v857_v23 = vpop.eup %856 }
 0x9a8   :  { %v420_v24 = vadd.f32 1.0, %v857_v23 }
 0x9aa   :  { %858 = vrcp.f32 %v420_v24  ;;  %v432_v30 = vand.u32 2147483648, %v420_v24  ;;  %vm426_vm8 = vweird.f32 %v420_v24  ;;  %v430_v31 = vand.u32 2147483647, %v420_v24 }
 0x9ac   :  { %v433_v12 = vor.u32 1.1754944e-38, %v432_v30  ;;  %vm431_vm10 = vcmp.eq.f32.partialorder %v430_v31, 8.507059e+37 }
 0x9b0   :  { %v859_v25 = vpop.eup %858 }
 0x9b1   :  { %v422_v26 = vmul.f32 %v859_v25, %v420_v24  ;;  %vm427_vm7 = vweird.f32 %v859_v25 }
 0x9b2   :  { %vm428_vm9 = vmor %vm426_vm8, %vm427_vm7 }
 0x9b3   :  { %v423_v27 = vsub.f32 1.0, %v422_v26 }
 0x9b5   :  { %v424_v28 = vmul.f32 %v859_v25, %v423_v27 }
 0x9b7   :  { %v425_v29 = vadd.f32 %v859_v25, %v424_v28 }
 0x9b9   :  { %v429_v32 = vsel %vm428_vm9, %v859_v25, %v425_v29 }
 0x9ba   :  { %v434_v33 = vsel %vm431_vm10, %v433_v12, %v429_v32 }
 0x9bb   :  { %v448_v40 = vsub.f32 1.0, %v434_v33  ;;  %v455_v44 = vmul.f32 %v434_v33, %v1078_v16 }
 0x9f9   :  { %v439_v41 = vpop.permute.xlu2 %438 }
 0x9fa   :  { %v441_v34 = vmul.f32 %v439_v41, %v434_v33 }
 0x9fc   :  { %443 = vrot.lane.b32.xlu0 %v441_v34, %s940_s29 }
 0xa6e   :  { %v444_v35 = vpop.permute.xlu0 %443 }
 0xa6f   :  { %v446_v37 = vadd.f32 %v444_v35, %v1090_v20 }
 0xa71   :  { %860 = vtanh.f32 %v446_v37 }
 0xa77   :  { %v861_v38 = vpop.eup %860 }
 0xa78   :  { %450 = vrot.lane.b32.xlu1 %v861_v38, %s942_s3 }
 0xaea   :  { %v451_v43 = vpop.permute.xlu1 %450 }
 0xaeb   :  { %v453_v45 = vmul.f32 %v451_v43, %v448_v40 }
 0xaed   :  { %v1097_v46 = vadd.f32 %v455_v44, %v453_v45 }
 0xaef   :  { %458 = vrot.lane.b32.xlu2 %v1097_v46, %s942_s3  ;;  %v524_v10 = vrot.slane %v1097_v46, 6 }
 0xb49   :  { %v459_v47 = vpop.permute.xlu2 %458 }
 0xb4a   :  { %812 = vmatmul.msk.f32.vlgmr.msrb.gmra.mxu3 %vm108_vm5, %v459_v47 }
 0xbcd   :  { %v479_v48 = vpop.f32.mrf.mxu3 }
 0xbce   :  { %v505_v49 = vadd.f32 %v479_v48, %v1016_v9  ;;  %v483_v51 = vrot.slane %v479_v48, 6 }
 0xbd0   :  { %v507_v50 = vrot.slane %v505_v49, 6  ;;  %v485_v52 = vadd.f32 %v483_v51, %v1090_v20 }
 0xbd2   :  { %508 = vrot.lane.b32.xlu0 %v507_v50, %s940_s29  ;;  %v813_v53 = vmul.f32 -1.442695, %v485_v52 }
 0xbd4   :  { %862 = vpow2.f32 %v813_v53 }
 0xbda   :  { %v863_v54 = vpop.eup %862 }
 0xbdb   :  { %v489_v55 = vadd.f32 1.0, %v863_v54 }
 0xbdd   :  { %864 = vrcp.f32 %v489_v55  ;;  %v501_v61 = vand.u32 2147483648, %v489_v55  ;;  %vm495_vm12 = vweird.f32 %v489_v55  ;;  %v499_v62 = vand.u32 2147483647, %v489_v55 }
 0xbdf   :  { %v502_v0 = vor.u32 1.1754944e-38, %v501_v61  ;;  %vm500_vm1 = vcmp.eq.f32.partialorder %v499_v62, 8.507059e+37 }
 0xbe3   :  { %v865_v56 = vpop.eup %864 }
 0xbe4   :  { %v491_v57 = vmul.f32 %v865_v56, %v489_v55  ;;  %vm496_vm11 = vweird.f32 %v865_v56 }
 0xbe5   :  { %vm497_vm13 = vmor %vm495_vm12, %vm496_vm11 }
 0xbe6   :  { %v492_v58 = vsub.f32 1.0, %v491_v57 }
 0xbe8   :  { %v493_v59 = vmul.f32 %v865_v56, %v492_v58 }
 0xbea   :  { %v494_v60 = vadd.f32 %v865_v56, %v493_v59 }
 0xbec   :  { %v498_v63 = vsel %vm497_vm13, %v865_v56, %v494_v60 }
 0xbed   :  { %v503_v2 = vsel %vm500_vm1, %v502_v0, %v498_v63  ;;  %v688_v63 = vrot.slane %v1061_v42, 2 }
 0xbee   :  { %v518_v8 = vsub.f32 1.0, %v503_v2  ;;  %v526_v15 = vmul.f32 %v524_v10, %v503_v2 }
 0xc44   :  { %v509_v1 = vpop.permute.xlu0 %508 }
 0xc45   :  { %v511_v3 = vmul.f32 %v509_v1, %v503_v2  ;;  %v695_v2 = vsel %vm672_vm14, %v1078_v16, %v688_v63 }
 0xc47   :  { %513 = vrot.lane.b32.xlu1 %v511_v3, %s940_s29  ;;  %v690_v3 = vrot.slane %v1033_v39, 2 }
 0xcb9   :  { %v514_v4 = vpop.permute.xlu1 %513 }
 0xcba   :  { %v516_v5 = vadd.f32 %v514_v4, %v1090_v20 }
 0xcbc   :  { %866 = vtanh.f32 %v516_v5 }
 0xcc2   :  { %v867_v7 = vpop.eup %866 }
 0xcc3   :  { %520 = vrot.lane.b32.xlu2 %v867_v7, %s942_s3 }
 0xd1d   :  { %v521_v11 = vpop.permute.xlu2 %520 }
 0xd1e   :  { %v523_v13 = vmul.f32 %v521_v11, %v518_v8 }
 0xd20   :  { %v1109_v14 = vadd.f32 %v526_v15, %v523_v13 }
 0xd22   :  { %v529_v18 = vrot.slane %v1109_v14, 2  ;;  %v596_v48 = vrot.slane %v1109_v14, 6  ;;  %v678_v53 = vsel %vm672_vm14, %v1097_v46, %v1109_v14 }
 0xd24   :  { %530 = vrot.lane.b32.xlu0 %v529_v18, %s942_s3 }
 0xd96   :  { %v531_v19 = vpop.permute.xlu0 %530 }
 0xd97   :  { %814 = vmatmul.msk.f32.vlgmr.msra.gmra.mxu0 %vm108_vm5, %v531_v19 }
 0xe14   :  { %v551_v21 = vpop.f32.mrf.mxu0 }
 0xe15   :  { %v577_v22 = vadd.f32 %v551_v21, %v1016_v9  ;;  %v555_v24 = vrot.slane %v551_v21, 4 }
 0xe17   :  { %v579_v23 = vrot.slane %v577_v22, 4  ;;  %v557_v25 = vadd.f32 %v555_v24, %v1090_v20  ;;  %v718_v24 = vld [vmem:[%s1200_s5 + $0x10] sm:$0xff] }
 0xe19   :  { %580 = vrot.lane.b32.xlu1 %v579_v23, %s940_s29  ;;  %v815_v26 = vmul.f32 -1.442695, %v557_v25  ;;  %v719_v23 = vld [vmem:[%s1200_s5 + $0x18] sm:$0xff] }
 0xe1a   :  { %742 = vmatpush.msrb.mxu2 %v719_v23 }
 0xe1b   :  { %868 = vpow2.f32 %v815_v26 }
 0xe1c   :  { %743 = vmatpush.msrb.mxu2 %v718_v24 }
 0xe21   :  { %v869_v27 = vpop.eup %868 }
 0xe22   :  { %v561_v28 = vadd.f32 1.0, %v869_v27 }
 0xe24   :  { %870 = vrcp.f32 %v561_v28  ;;  %v573_v41 = vand.u32 2147483648, %v561_v28  ;;  %vm567_vm3 = vweird.f32 %v561_v28  ;;  %v571_v33 = vand.u32 2147483647, %v561_v28 }
 0xe26   :  { %v574_v35 = vor.u32 1.1754944e-38, %v573_v41  ;;  %vm572_vm7 = vcmp.eq.f32.partialorder %v571_v33, 8.507059e+37  ;;  %v717_v33 = vld [vmem:[%s1200_s5 + $0x8] sm:$0xff] }
 0xe27   :  { %744 = vmatpush.msrb.mxu2 %v717_v33 }
 0xe2a   :  { %v871_v29 = vpop.eup %870 }
 0xe2b   :  { %v563_v30 = vmul.f32 %v871_v29, %v561_v28  ;;  %vm568_vm2 = vweird.f32 %v871_v29 }
 0xe2c   :  { %vm569_vm4 = vmor %vm567_vm3, %vm568_vm2 }
 0xe2d   :  { %v564_v31 = vsub.f32 1.0, %v563_v30 }
 0xe2f   :  { %v565_v32 = vmul.f32 %v871_v29, %v564_v31  ;;  %v686_v31 = vrot.slane %v1097_v46, 2 }
 0xe31   :  { %v566_v12 = vadd.f32 %v871_v29, %v565_v32 }
 0xe33   :  { %v570_v34 = vsel %vm569_vm4, %v871_v29, %v566_v12 }
 0xe34   :  { %v575_v38 = vsel %vm572_vm7, %v574_v35, %v570_v34  ;;  %v716_v34 = vld [vmem:[%s1200_s5] sm:$0xff] }
 0xe35   :  { %v590_v47 = vsub.f32 1.0, %v575_v38  ;;  %v598_v50 = vmul.f32 %v596_v48, %v575_v38  ;;  %745 = vmatpush.msrb.mxu2 %v716_v34 }
 0xe8b   :  { %v581_v37 = vpop.permute.xlu1 %580 }
 0xe8c   :  { %v583_v40 = vmul.f32 %v581_v37, %v575_v38 }
 0xe8e   :  { %585 = vrot.lane.b32.xlu2 %v583_v40, %s940_s29 }
 0xee8   :  { %v586_v43 = vpop.permute.xlu2 %585 }
 0xee9   :  { %v588_v44 = vadd.f32 %v586_v43, %v1090_v20  ;;  %v758_v43 = vld [vmem:[%s1202_s7] sm:$0xff] }
 0xeea   :  { %780 = vmatpush.msra.mxu3 %v758_v43 }
 0xeeb   :  { %872 = vtanh.f32 %v588_v44  ;;  %v831_v44 = vld [vmem:[%s1201_s6] ss:$0 sm:$0xff] }
 0xef1   :  { %v873_v45 = vpop.eup %872 }
 0xef2   :  { %592 = vrot.lane.b32.xlu0 %v873_v45, %s942_s3 }
 0xf64   :  { %v593_v49 = vpop.permute.xlu0 %592 }
 0xf65   :  { %v595_v51 = vmul.f32 %v593_v49, %v590_v47 }
 0xf67   :  { %v1123_v52 = vadd.f32 %v598_v50, %v595_v51 }
 0xf69   :  { %v601_v54 = vrot.slane %v1123_v52, 4  ;;  %v679_v55 = vsel %vm674_vm15, %v678_v53, %v1123_v52 }
 0xf6b   :  { %602 = vrot.lane.b32.xlu1 %v601_v54, %s942_s3 }
 0xfdd   :  { %v603_v56 = vpop.permute.xlu1 %602 }
 0xfde   :  { %816 = vmatmul.msk.f32.vlgmr.msra.gmra.mxu1 %vm108_vm5, %v603_v56 }
0x105b   :  { %v623_v57 = vpop.f32.mrf.mxu1 }
0x105c   :  { %v627_v58 = vrot.slane %v623_v57, 2  ;;  %v649_v59 = vadd.f32 %v623_v57, %v1016_v9  ;;  %v696_v9 = vsel %vm674_vm15, %v695_v2, %v314_v36  ;;  %v668_v36 = vrot.slane %v1123_v52, 6 }
0x105d   :  { %v697_v4 = vsel %vm676_vm6, %v696_v9, %v690_v3 }
0x105e   :  { %v629_v60 = vadd.f32 %v627_v58, %v1090_v20  ;;  %v651_v61 = vrot.slane %v649_v59, 2 }
0x1060   :  { %v817_v62 = vmul.f32 -1.442695, %v629_v60  ;;  %652 = vrot.lane.b32.xlu2 %v651_v61, %s940_s29 }
0x1062   :  { %874 = vpow2.f32 %v817_v62 }
0x1068   :  { %v875_v0 = vpop.eup %874  ;;  %700 = vrot.lane.b32.xlu2 %v1081_v17, %s942_s3 }
0x1069   :  { %v633_v1 = vadd.f32 1.0, %v875_v0 }
0x106b   :  { %876 = vrcp.f32 %v633_v1  ;;  %v645_v8 = vand.u32 2147483648, %v633_v1  ;;  %v643_v10 = vand.u32 2147483647, %v633_v1  ;;  %vm639_vm9 = vweird.f32 %v633_v1 }
0x106d   :  { %v646_v16 = vor.u32 1.1754944e-38, %v645_v8  ;;  %vm644_vm11 = vcmp.eq.f32.partialorder %v643_v10, 8.507059e+37 }
0x1070   :  { %710 = vrot.lane.b32.xlu2 %v697_v4, %s942_s3 }
0x1071   :  { %v877_v42 = vpop.eup %876 }
0x1072   :  { %v635_v5 = vmul.f32 %v877_v42, %v633_v1  ;;  %vm640_vm8 = vweird.f32 %v877_v42 }
0x1073   :  { %vm641_vm10 = vmor %vm639_vm9, %vm640_vm8 }
0x1074   :  { %v636_v7 = vsub.f32 1.0, %v635_v5 }
0x1076   :  { %v637_v17 = vmul.f32 %v877_v42, %v636_v7 }
0x1078   :  { %v638_v11 = vadd.f32 %v877_v42, %v637_v17 }
0x107a   :  { %v642_v6 = vsel %vm641_vm10, %v877_v42, %v638_v11 }
0x107b   :  { %v647_v39 = vsel %vm644_vm11, %v646_v16, %v642_v6 }
0x107c   :  { %v670_v13 = vmul.f32 %v668_v36, %v647_v39  ;;  %v662_v25 = vsub.f32 1.0, %v647_v39 }
0x10ba   :  { %v653_v15 = vpop.permute.xlu2 %652 }
0x10bb   :  { %v655_v18 = vmul.f32 %v653_v15, %v647_v39 }
0x10bd   :  { %657 = vrot.lane.b32.xlu0 %v655_v18, %s940_s29 }
0x10c2   :  { %v701_v46 = vpop.permute.xlu2 %700 }
0x10ca   :  { %v711_v38 = vpop.permute.xlu2 %710 }
0x112f   :  { %v658_v19 = vpop.permute.xlu0 %657 }
0x1130   :  { %v660_v21 = vadd.f32 %v658_v19, %v1090_v20  ;;  %v684_v20 = vrot.slane %v1123_v52, 2 }
0x1132   :  { %878 = vtanh.f32 %v660_v21 }
0x1138   :  { %v879_v22 = vpop.eup %878 }
0x1139   :  { %664 = vrot.lane.b32.xlu1 %v879_v22, %s942_s3 }
0x11ab   :  { %v665_v26 = vpop.permute.xlu1 %664 }
0x11ac   :  { %v667_v27 = vmul.f32 %v665_v26, %v662_v25 }
0x11ae   :  { %v671_v28 = vadd.f32 %v670_v13, %v667_v27 }
0x11b0   :  { %v682_v29 = vrot.slane %v671_v28, 6  ;;  %v680_v30 = vsel %vm676_vm6, %v679_v55, %v671_v28 }
0x11b1   :  { %702 = vrot.lane.b32.xlu1 %v680_v30, %s942_s3 }
0x11b2   :  { %v692_v32 = vsel %vm672_vm14, %v682_v29, %v684_v20  ;;  %vm755_vm14 = vcmask 64512  }
0x11b3   :  { %v693_v12 = vsel %vm674_vm15, %v692_v32, %v596_v48 }
0x11b4   :  { %v694_v41 = vsel %vm676_vm6, %v693_v12, %v686_v31 }
0x11b5   :  { %708 = vrot.lane.b32.xlu0 %v694_v41, %s942_s3 }
0x1223   :  { %v703_v37 = vpop.permute.xlu1 %702 }
0x1224   :  { %v715_v40 = vsel %vm71_vm0, %v703_v37, %v711_v38 }
0x1227   :  { %v709_v35 = vpop.permute.xlu0 %708 }
0x1228   :  { %v714_v14 = vsel %vm71_vm0, %v701_v46, %v709_v35  ;;  %vm788_vm0 = vcmask 7168  }
0x1229   :  { %818 = vmatmul.msk.f32.vlgmr.msrb.gmra.mxu2 %vm108_vm5, %v714_v14 }
0x1231   :  { %819 = vmatmul.msk.f32.gmra.mxu2 %vm108_vm5, %v715_v40 }
0x12ac   :  { %v747_v45 = vpop.f32.mrf.mxu2 }
0x12ad   :  { %v748_v47 = vadd.f32 %v831_v44, %v747_v45 }
0x12af   :  { %880 = vtanh.f32 %v748_v47 }
0x12b4   :  { %v750_v48 = vpop.f32.mrf.mxu2 }
0x12b5   :  { %v881_v49 = vpop.eup %880  ;;  %v751_v50 = vadd.f32 %v831_v44, %v750_v48 }
0x12b6   :  { %756 = vst.msk [vmem:[%s1203_s8] sm:$0xff] %vm755_vm14, %v881_v49  ;;  %820 = vmatmul.msk.f32.vlgmr.msra.gmra.mxu3 %vm755_vm14, %v881_v49 }
0x12b7   :  { %882 = vtanh.f32 %v751_v50 }
0x12bd   :  { %v883_v51 = vpop.eup %882 }
0x12be   :  { %757 = vst.msk [vmem:[%s1203_s8 + $0x8] sm:$0xff] %vm755_vm14, %v883_v51  ;;  %821 = vmatmul.msk.f32.gmra.mxu3 %vm755_vm14, %v883_v51 }
0x1339   :  { %v782_v52 = vpop.f32.mrf.mxu3 }
0x133a   :  { %789 = vst.msk [vmem:[%s1204_s9] sm:$0xff] %vm788_vm0, %v782_v52 }
0x1341   :  { %v785_v53 = vpop.f32.mrf.mxu3 }
0x1342   :  { %790 = vst.msk [vmem:[%s1204_s9 + $0x8] sm:$0xff] %vm788_vm0, %v785_v53 }
0x1343   :  { %799 = vsyncpa [#allocation3], 1 }
0x1344   :  { %800 = vsyncpa [#allocation5], 1 }

</bundles_post_ra>
